<compile_context>
chip_gen: v5e
topology: v5e:2x2
jax: 0.10.0
libtpu: 0.0.40
codegen_flags: <defaults>
</compile_context>

<pallas_src>
import jax
import jax.numpy as jnp
from jax.experimental import pallas as pl
from jax.experimental.pallas import tpu as pltpu

EPS = 1e-5


def discriminator_kernel(params_ref, x_ref, w1_ref, b2_ref, o_ref):
    # params_ref: (4, H)  rows = [b1, gamma, beta, w2^T]   (VMEM, resident)
    # x_ref     : (B, D_in)                                (VMEM, per grid step)
    # w1_ref    : (D_in, H)                                (VMEM, resident)
    # b2_ref    : (1,)                                     (SMEM scalar)
    # o_ref     : (1, B)   lane-dense output slab
    x = x_ref[...]

    # d_fc1
    h = jnp.dot(x, w1_ref[...], preferred_element_type=jnp.float32) + params_ref[0:1, :]

    # d_bn1 : BatchNorm1d training mode (biased batch variance), folded into one FMA.
    mean = jnp.mean(h, axis=0, keepdims=True)           # (1, H)
    mean_sq = jnp.mean(h * h, axis=0, keepdims=True)    # (1, H)
    var = mean_sq - mean * mean
    scale = params_ref[1:2, :] * jax.lax.rsqrt(var + EPS)   # gamma * rsqrt(var+eps)
    shift = params_ref[2:3, :] - mean * scale               # beta - mean*scale

    # d_sigmoid1
    s = jax.nn.sigmoid(h * scale + shift)

    # d_fc3 (H -> 1) as a lane reduction (avoids an N=1 MXU matmul), then d_sigmoid2.
    logits = jnp.sum(s * params_ref[3:4, :], axis=-1)        # (B,)
    o_ref[...] = jax.nn.sigmoid(logits + b2_ref[0])[None, :]  # (1, B) lane-dense


def discriminator_forward(x, params):
    """x: (B, D_in) or (N, B, D_in)  ->  (B, 1) or (N, B, 1).

    When x has a leading N axis, all N independent batches go through ONE pallas_call
    with weights resident in VMEM (BatchNorm stats are per (B, D_in) slab, matching
    one nn.BatchNorm1d training-mode forward per slab).
    """
    w1, b1, gamma, beta, w2, b2 = params
    single = (x.ndim == 2)
    if single:
        x = x[None]                                   # (1, B, D_in)
    x = x.astype(jnp.float32)
    N, B, D_in = x.shape
    H = w1.shape[1]

    # Consolidate the four (H,) params into one slab: 1 DMA instead of 4.
    small = jnp.stack(
        [b1, gamma, beta, w2.reshape(H)], axis=0
    ).astype(jnp.float32)                              # (4, H)
    b2_smem = b2.reshape(1).astype(jnp.float32)        # SMEM scalar

    out = pl.pallas_call(
        discriminator_kernel,
        out_shape=jax.ShapeDtypeStruct((N, 1, B), jnp.float32),
        grid=(N,),
        in_specs=[
            pl.BlockSpec((4, H), lambda i: (0, 0)),                # small params, resident
            pl.BlockSpec((None, B, D_in), lambda i: (i, 0, 0)),    # per-slab activations
            pl.BlockSpec((D_in, H), lambda i: (0, 0)),             # w1, resident
            pl.BlockSpec(memory_space=pltpu.MemorySpace.SMEM),     # b2 scalar
        ],
        out_specs=pl.BlockSpec((None, 1, B), lambda i: (i, 0, 0)),
        compiler_params=pltpu.CompilerParams(
            dimension_semantics=("parallel",),
        ),
    )(small, x, w1, b2_smem)

    out = out.reshape(N, B, 1)                          # (N,1,B) -> (N,B,1): same element order
    return out[0] if single else out


def init_params(key, input_dim, hidden_dim):
    # PyTorch nn.Linear default init U[-1/sqrt(fan_in), +1/sqrt(fan_in)];
    # BatchNorm1d: weight=1, bias=0.
    k1, k2, k3, k4 = jax.random.split(key, 4)
    lim1 = 1.0 / jnp.sqrt(input_dim)
    lim2 = 1.0 / jnp.sqrt(hidden_dim)
    w1 = jax.random.uniform(k1, (input_dim, hidden_dim), jnp.float32, -lim1, lim1)
    b1 = jax.random.uniform(k2, (hidden_dim,), jnp.float32, -lim1, lim1)
    gamma = jnp.ones((hidden_dim,), jnp.float32)
    beta = jnp.zeros((hidden_dim,), jnp.float32)
    w2 = jax.random.uniform(k3, (hidden_dim, 1), jnp.float32, -lim2, lim2)
    b2 = jax.random.uniform(k4, (1,), jnp.float32, -lim2, lim2)
    return (w1, b1, gamma, beta, w2, b2)


def reference_forward(x, params):
    # Pure-JAX reference matching the PyTorch module (BatchNorm1d in training mode).
    w1, b1, gamma, beta, w2, b2 = params
    h = x @ w1 + b1
    mean = jnp.mean(h, axis=0, keepdims=True)
    var = jnp.mean((h - mean) ** 2, axis=0, keepdims=True)   # biased batch variance
    hn = (h - mean) / jnp.sqrt(var + EPS) * gamma + beta
    s = jax.nn.sigmoid(hn)
    return jax.nn.sigmoid(s @ w2 + b2)


if __name__ == "__main__":
    key = jax.random.PRNGKey(0)
    kx, kxb, kp = jax.random.split(key, 3)

    B, INPUT_DIM, HIDDEN_DIM = 8, 32, 32       # small shapes consistent with the module
    NUM_BATCHES = 4                            # amortized multi-batch path

    params = init_params(kp, INPUT_DIM, HIDDEN_DIM)

    # Single-batch path: (B, D_in) -> (B, 1)
    x = jax.random.normal(kx, (B, INPUT_DIM), jnp.float32)
    out = jax.block_until_ready(discriminator_forward(x, params))
    ref = reference_forward(x, params)
    assert out.shape == (B, 1)
    assert jnp.allclose(out, ref, atol=1e-5, rtol=1e-4)

    # Multi-batch path: (N, B, D_in) -> (N, B, 1), one pallas_call, weights resident.
    xb = jax.random.normal(kxb, (NUM_BATCHES, B, INPUT_DIM), jnp.float32)
    outb = jax.block_until_ready(discriminator_forward(xb, params))
    refb = jax.vmap(lambda xi: reference_forward(xi, params))(xb)
    assert outb.shape == (NUM_BATCHES, B, 1)
    assert jnp.allclose(outb, refb, atol=1e-5, rtol=1e-4)

    print("KERNEL_OK")
</pallas_src>

<mosaic_0001>
module attributes {stable_mosaic.version = 11 : i64} {
  func.func @discriminator_kernel(%arg0: i32, %arg1: memref<4x32xf32, #tpu.memory_space<vmem>>, %arg2: memref<1x8x32xf32, #tpu.memory_space<vmem>>, %arg3: memref<32x32xf32, #tpu.memory_space<vmem>>, %arg4: memref<1xf32, #tpu.memory_space<smem>>, %arg5: memref<1x1x8xf32, #tpu.memory_space<vmem>>) attributes {dimension_semantics = [#tpu.dimension_semantics<parallel>], iteration_bounds = array<i64: 1>, scalar_prefetch = 0 : i64, scratch_operands = 0 : i64, tpu.core_type = #tpu.core_type<tc>, window_params = [{pipeline_mode = #tpu.pipeline_mode<synchronous>, transform_indices = @transform_0, window_bounds = array<i64: 4, 32>}, {transform_indices = @transform_1, window_bounds = array<i64: 1, 8, 32>}, {pipeline_mode = #tpu.pipeline_mode<synchronous>, transform_indices = @transform_2, window_bounds = array<i64: 32, 32>}, {transform_indices = @transform_3, window_bounds = array<i64: 1>}, {transform_indices = @transform_4, window_bounds = array<i64: 1, 1, 8>}]} {
    %c0 = arith.constant 0 : index
    %c0_0 = arith.constant 0 : index
    %c0_1 = arith.constant 0 : index
    %0 = vector.load %arg2[%c0, %c0_0, %c0_1] : memref<1x8x32xf32, #tpu.memory_space<vmem>>, vector<1x8x32xf32>
    %1 = vector.shape_cast %0 : vector<1x8x32xf32> to vector<8x32xf32>
    %c0_2 = arith.constant 0 : index
    %c0_3 = arith.constant 0 : index
    %2 = vector.load %arg3[%c0_2, %c0_3] : memref<32x32xf32, #tpu.memory_space<vmem>>, vector<32x32xf32>
    %cst = arith.constant dense<0.000000e+00> : vector<8x32xf32>
    %3 = tpu.matmul %1, %2, %cst {dimension_numbers = #tpu.dot_dimension_numbers<[1], [0], [0], [1], [0, 0, 1, 1], [], []>} : vector<8x32xf32>, vector<32x32xf32>, vector<8x32xf32> -> vector<8x32xf32>
    %c0_4 = arith.constant 0 : index
    %c0_5 = arith.constant 0 : index
    %4 = vector.load %arg1[%c0_4, %c0_5] : memref<4x32xf32, #tpu.memory_space<vmem>>, vector<1x32xf32>
    %5 = vector.broadcast %4 : vector<1x32xf32> to vector<8x32xf32>
    %6 = arith.addf %3, %5 : vector<8x32xf32>
    %cst_6 = arith.constant dense<0.000000e+00> : vector<32xf32>
    %7 = vector.multi_reduction <add>, %6, %cst_6 [0] : vector<8x32xf32> to vector<32xf32>
    %8 = vector.shape_cast %7 : vector<32xf32> to vector<1x32xf32>
    %cst_7 = arith.constant 8.000000e+00 : f32
    %9 = vector.broadcast %cst_7 : f32 to vector<1x32xf32>
    %10 = arith.divf %8, %9 : vector<1x32xf32>
    %11 = arith.mulf %6, %6 : vector<8x32xf32>
    %cst_8 = arith.constant dense<0.000000e+00> : vector<32xf32>
    %12 = vector.multi_reduction <add>, %11, %cst_8 [0] : vector<8x32xf32> to vector<32xf32>
    %13 = vector.shape_cast %12 : vector<32xf32> to vector<1x32xf32>
    %cst_9 = arith.constant 8.000000e+00 : f32
    %14 = vector.broadcast %cst_9 : f32 to vector<1x32xf32>
    %15 = arith.divf %13, %14 : vector<1x32xf32>
    %16 = arith.mulf %10, %10 : vector<1x32xf32>
    %17 = arith.subf %15, %16 : vector<1x32xf32>
    %c1 = arith.constant 1 : index
    %c0_10 = arith.constant 0 : index
    %18 = vector.load %arg1[%c1, %c0_10] : memref<4x32xf32, #tpu.memory_space<vmem>>, vector<1x32xf32>
    %cst_11 = arith.constant 9.99999974E-6 : f32
    %19 = vector.broadcast %cst_11 : f32 to vector<1x32xf32>
    %20 = arith.addf %17, %19 : vector<1x32xf32>
    %21 = math.rsqrt %20 : vector<1x32xf32>
    %22 = arith.mulf %18, %21 : vector<1x32xf32>
    %c2 = arith.constant 2 : index
    %c0_12 = arith.constant 0 : index
    %23 = vector.load %arg1[%c2, %c0_12] : memref<4x32xf32, #tpu.memory_space<vmem>>, vector<1x32xf32>
    %24 = arith.mulf %10, %22 : vector<1x32xf32>
    %25 = arith.subf %23, %24 : vector<1x32xf32>
    %26 = vector.broadcast %22 : vector<1x32xf32> to vector<8x32xf32>
    %27 = arith.mulf %6, %26 : vector<8x32xf32>
    %28 = vector.broadcast %25 : vector<1x32xf32> to vector<8x32xf32>
    %29 = arith.addf %27, %28 : vector<8x32xf32>
    %30 = arith.negf %29 : vector<8x32xf32>
    %31 = math.exp %30 : vector<8x32xf32>
    %cst_13 = arith.constant 1.000000e+00 : f32
    %32 = vector.broadcast %cst_13 : f32 to vector<8x32xf32>
    %33 = arith.addf %32, %31 : vector<8x32xf32>
    %34 = arith.divf %32, %33 : vector<8x32xf32>
    %c3 = arith.constant 3 : index
    %c0_14 = arith.constant 0 : index
    %35 = vector.load %arg1[%c3, %c0_14] : memref<4x32xf32, #tpu.memory_space<vmem>>, vector<1x32xf32>
    %36 = vector.broadcast %35 : vector<1x32xf32> to vector<8x32xf32>
    %37 = arith.mulf %34, %36 : vector<8x32xf32>
    %cst_15 = arith.constant dense<0.000000e+00> : vector<8xf32>
    %38 = vector.multi_reduction <add>, %37, %cst_15 [1] : vector<8x32xf32> to vector<8xf32>
    %c0_16 = arith.constant 0 : index
    %39 = memref.load %arg4[%c0_16] : memref<1xf32, #tpu.memory_space<smem>>
    %40 = vector.broadcast %39 : f32 to vector<8xf32>
    %41 = arith.addf %38, %40 : vector<8xf32>
    %42 = arith.negf %41 : vector<8xf32>
    %43 = math.exp %42 : vector<8xf32>
    %cst_17 = arith.constant 1.000000e+00 : f32
    %44 = vector.broadcast %cst_17 : f32 to vector<8xf32>
    %45 = arith.addf %44, %43 : vector<8xf32>
    %46 = arith.divf %44, %45 : vector<8xf32>
    %47 = vector.shape_cast %46 : vector<8xf32> to vector<1x8xf32>
    %c0_18 = arith.constant 0 : index
    %c0_19 = arith.constant 0 : index
    %c0_20 = arith.constant 0 : index
    %48 = vector.load %arg5[%c0_18, %c0_19, %c0_20] : memref<1x1x8xf32, #tpu.memory_space<vmem>>, vector<1x1x8xf32>
    %49 = vector.shape_cast %48 : vector<1x1x8xf32> to vector<1x8xf32>
    %50 = vector.shape_cast %47 : vector<1x8xf32> to vector<1x1x8xf32>
    tpu.vector_store %arg5[%c0_18, %c0_19, %c0_20], %50 {strides = array<i32>} : memref<1x1x8xf32, #tpu.memory_space<vmem>>, vector<1x1x8xf32>,
    return
  }
  func.func @transform_0(%arg0: i32) -> (i32, i32) {
    %c0_i32 = arith.constant 0 : i32
    %c0_i32_0 = arith.constant 0 : i32
    %c0_i32_1 = arith.constant 0 : i32
    return %c0_i32, %c0_i32_0 : i32, i32
  }
  func.func @transform_1(%arg0: i32) -> (i32, i32, i32) {
    %c0_i32 = arith.constant 0 : i32
    %c0_i32_0 = arith.constant 0 : i32
    %c0_i32_1 = arith.constant 0 : i32
    return %arg0, %c0_i32, %c0_i32_0 : i32, i32, i32
  }
  func.func @transform_2(%arg0: i32) -> (i32, i32) {
    %c0_i32 = arith.constant 0 : i32
    %c0_i32_0 = arith.constant 0 : i32
    %c0_i32_1 = arith.constant 0 : i32
    return %c0_i32, %c0_i32_0 : i32, i32
  }
  func.func @transform_3(%arg0: i32) -> i32 {
    %c0_i32 = arith.constant 0 : i32
    %c0_i32_0 = arith.constant 0 : i32
    return %c0_i32 : i32
  }
  func.func @transform_4(%arg0: i32) -> (i32, i32, i32) {
    %c0_i32 = arith.constant 0 : i32
    %c0_i32_0 = arith.constant 0 : i32
    %c0_i32_1 = arith.constant 0 : i32
    return %arg0, %c0_i32, %c0_i32_0 : i32, i32, i32
  }
}

</mosaic_0001>

<bundles_post_ra>
// kernel: tpu_custom_call.1
= control target key start
LH: loop header
LB: loop body
LE: loop exit
PB: predicated region body
PF: predicated region fallthrough
CT: control target
= control target key end

     0   :  { %10 = vsyncpa [#allocation4], 0  ;;  %s388_s0 = inlined_call_operand.hbm [shape: f32[4,32], index: 0, kind: input, shape index: {}]   ;;  %s389_s1 = inlined_call_operand.hbm [shape: f32[1,8,32], index: 1, kind: input, shape index: {}]   ;;  %s390_s2 = inlined_call_operand.hbm [shape: f32[32,32], index: 2, kind: input, shape index: {}]   ;;  %s391_s3 = inlined_call_operand.<no memory space> [shape: f32[1], index: 3, kind: input, shape index: {}]   ;;  %s392_s4 = inlined_call_operand.hbm [shape: f32[1,1,8], index: 4, kind: output, shape index: {}]  }
   0x1   :  { %11 = vsyncpa [#allocation7], 0  ;;  %s29_s17 = sshll.u32 %s389_s1, 4  ;;  %s30_s17 = int_to_ptr.hbm [resolvable:$true] %s29_s17 }
   0x2   :  { %12 = vsyncpa [#allocation5], 0  ;;  %s337_s18 = smov [#allocation6]   ;;  %s18_s22 = sshll.u32 %s388_s0, 4  ;;  %s19_s22 = int_to_ptr.hbm [resolvable:$true] %s18_s22 }
   0x3   :  { %s31_s19 = sshll.u32 %s337_s18, 4  ;;  %s338_s23 = smov [#allocation3]   ;;  %s32_s19 = int_to_ptr.vmem [resolvable:$true] %s31_s19 }
   0x4   :  { %34 = dma.hbm_to_vmem [thread:$0]  %s30_s17, 128, %s32_s19, [#allocation7]  }
   0x5   :  { %s20_s24 = sshll.u32 %s338_s23, 4  ;;  %s39_s27 = sshll.u32 %s390_s2, 4  ;;  %s21_s24 = int_to_ptr.vmem [resolvable:$true] %s20_s24  ;;  %s40_s27 = int_to_ptr.hbm [resolvable:$true] %s39_s27 }
   0x6   :  { %23 = dma.hbm_to_vmem [thread:$0]  %s19_s22, 64, %s21_s24, [#allocation4]  }
   0x7   :  { %s339_s1 = smov [#allocation8]   ;;  %s340_s29 = smov 128  }
   0x8   :  { %s41_s28 = sshll.u32 %s339_s1, 4  ;;  %s341_s30 = smov 8   ;;  %s42_s28 = int_to_ptr.vmem [resolvable:$true] %s41_s28 }
   0x9   :  { %47 = dma.hbm_to_vmem [thread:$0]  %s40_s27, 512, %s42_s28, [#allocation7], %s340_s29, %s340_s29, %s341_s30  }
   0xa   :  { %331 = dma.done.wait [#allocation4], 64  }
   0xb   :  { %332 = vsyncadd [#allocation4], 4294967232 }
   0xc   :  { %333 = dma.done.wait [#allocation7], 640  }
   0xd   :  { %334 = vsyncadd [#allocation7], 4294966656  ;;  %v66_v0 = vld [vmem:[#allocation8 + $0x18] sm:$0xff]  ;;  %v65_v1 = vld [vmem:[#allocation8 + $0x10] sm:$0xff]  ;;  %vm69_vm0 = vcmask 261120   ;;  %v342_v5 = vmov 8.0  }
   0xe   :  { %85 = vmatpush.msra.mxu0 %v66_v0  ;;  %v64_v2 = vld [vmem:[#allocation8 + $0x8] sm:$0xff]  ;;  %v63_v3 = vld [vmem:[#allocation8] sm:$0xff]  ;;  %v62_v4 = vld [vmem:[#allocation6] sm:$0xff]  ;;  %223 = vrcp.f32 %v342_v5  ;;  %s200_s8 = sshll.u32 %s392_s4, 4  ;;  %vm191_vm13 = vcmask 57344   ;;  %s201_s8 = int_to_ptr.hbm [resolvable:$true] %s200_s8 }
   0xf   :  { %v221_v7 = vld [vmem:[#allocation3] ss:$0 sm:$0xff]  ;;  %v119_v40 = vld [vmem:[#allocation3 + $0x1] sm:$0x1]  ;;  %v132_v44 = vld [vmem:[#allocation3 + $0x2] sm:$0x1] }
  0x10   :  { %86 = vmatpush.msra.mxu0 %v65_v1  ;;  %v222_v61 = vld [vmem:[#allocation3 + $0x3] ss:$0 sm:$0xff] }
  0x12   :  { %87 = vmatpush.msra.mxu0 %v64_v2 }
  0x14   :  { %88 = vmatpush.msra.mxu0 %v63_v3  ;;  %v224_v6 = vpop.eup %223  ;;  %v165_v3 = vstv %s391_s3  ;;  %s343_s3 = smov [#allocation9]  }
  0x15   :  { %211 = vmatmul.msk.f32.vlgmr.msra.gmra.mxu0 %vm69_vm0, %v62_v4  ;;  %v101_v8 = vmul.f32 8.0, %v224_v6  ;;  %vm105_vm1 = vweird.f32 %v224_v6  ;;  %s198_s5 = sshll.u32 %s343_s3, 4  ;;  %s199_s5 = int_to_ptr.vmem [resolvable:$true] %s198_s5 }
  0x17   :  { %v102_v11 = vsub.f32 1.0, %v101_v8 }
  0x19   :  { %v103_v15 = vmul.f32 %v224_v6, %v102_v11 }
  0x1b   :  { %v104_v21 = vadd.f32 %v224_v6, %v103_v15 }
  0x1d   :  { %v106_v26 = vsel %vm105_vm1, %v224_v6, %v104_v21 }
  0x92   :  { %v90_v9 = vpop.f32.mrf.mxu0 }
  0x93   :  { %v91_v10 = vadd.f32 %v221_v7, %v90_v9 }
  0x95   :  { %v93_v12 = vsel %vm69_vm0, %v91_v10, 0.0  ;;  %v108_v13 = vmul.f32 %v91_v10, %v91_v10 }
  0x96   :  { %v94_v14 = vrot.slane %v93_v12, 4 }
  0x97   :  { %v109_v16 = vsel %vm69_vm0, %v108_v13, 0.0 }
  0x98   :  { %v95_v17 = vadd.f32 %v94_v14, %v93_v12  ;;  %v110_v18 = vrot.slane %v109_v16, 4  ;;  %v187_v12 = vlaneseq }
  0x9a   :  { %v96_v19 = vrot.slane %v95_v17, 2  ;;  %v111_v20 = vadd.f32 %v110_v18, %v109_v16 }
  0x9c   :  { %v97_v22 = vadd.f32 %v96_v19, %v95_v17  ;;  %v112_v23 = vrot.slane %v111_v20, 2  ;;  %v188_v17 = vand.u32 127, %v187_v12 }
  0x9e   :  { %v98_v24 = vrot.slane %v97_v22, 1  ;;  %v113_v25 = vadd.f32 %v112_v23, %v111_v20 }
  0xa0   :  { %v99_v27 = vadd.f32 %v98_v24, %v97_v22  ;;  %v114_v28 = vrot.slane %v113_v25, 1 }
  0xa2   :  { %v107_v29 = vmul.f32 %v106_v26, %v99_v27  ;;  %v115_v30 = vadd.f32 %v114_v28, %v113_v25 }
  0xa4   :  { %v116_v31 = vmul.f32 %v115_v30, %v106_v26  ;;  %v117_v32 = vmul.f32 %v107_v29, %v107_v29 }
  0xa6   :  { %v118_v33 = vsub.f32 %v116_v31, %v117_v32 }
  0xa8   :  { %v120_v34 = vadd.f32 1e-05, %v118_v33 }
  0xaa   :  { %225 = vrsqrt.f32 %v120_v34  ;;  %vm127_vm3 = vweird.f32 %v120_v34 }
  0xb0   :  { %v226_v35 = vpop.eup %225 }
  0xb1   :  { %v122_v36 = vmul.f32 %v226_v35, %v120_v34  ;;  %vm128_vm2 = vweird.f32 %v226_v35 }
  0xb2   :  { %vm129_vm4 = vmor %vm127_vm3, %vm128_vm2 }
  0xb3   :  { %v123_v37 = vmul.f32 %v226_v35, %v122_v36 }
  0xb5   :  { %v124_v38 = vmul.f32 0.5, %v123_v37 }
  0xb7   :  { %v125_v39 = vsub.f32 1.5, %v124_v38 }
  0xb9   :  { %v126_v41 = vmul.f32 %v226_v35, %v125_v39 }
  0xbb   :  { %v130_v42 = vsel %vm129_vm4, %v226_v35, %v126_v41 }
  0xbc   :  { %v131_v43 = vmul.f32 %v130_v42, %v119_v40 }
  0xbe   :  { %v133_v45 = vmul.f32 %v131_v43, %v107_v29  ;;  %v135_v46 = vperm.slane %v131_v43, 0 }
  0xc0   :  { %v134_v47 = vsub.f32 %v132_v44, %v133_v45  ;;  %v136_v48 = vmul.f32 %v135_v46, %v91_v10 }
  0xc2   :  { %v137_v49 = vperm.slane %v134_v47, 0 }
  0xc4   :  { %v138_v50 = vadd.f32 %v137_v49, %v136_v48 }
  0xc6   :  { %v212_v51 = vmul.f32 -1.442695, %v138_v50 }
  0xc8   :  { %227 = vpow2.f32 %v212_v51 }
  0xce   :  { %v228_v52 = vpop.eup %227 }
  0xcf   :  { %v142_v53 = vadd.f32 1.0, %v228_v52 }
  0xd1   :  { %229 = vrcp.f32 %v142_v53  ;;  %v154_v57 = vand.u32 2147483648, %v142_v53  ;;  %v152_v59 = vand.u32 2147483647, %v142_v53  ;;  %vm148_vm6 = vweird.f32 %v142_v53 }
  0xd3   :  { %v155_v62 = vor.u32 1.1754944e-38, %v154_v57  ;;  %vm153_vm8 = vcmp.eq.f32.partialorder %v152_v59, 8.507059e+37 }
  0xd7   :  { %v230_v54 = vpop.eup %229 }
  0xd8   :  { %v144_v55 = vmul.f32 %v230_v54, %v142_v53  ;;  %vm149_vm5 = vweird.f32 %v230_v54 }
  0xd9   :  { %vm150_vm7 = vmor %vm148_vm6, %vm149_vm5 }
  0xda   :  { %v145_v56 = vsub.f32 1.0, %v144_v55 }
  0xdc   :  { %v146_v58 = vmul.f32 %v230_v54, %v145_v56 }
  0xde   :  { %v147_v60 = vadd.f32 %v230_v54, %v146_v58 }
  0xe0   :  { %v151_v63 = vsel %vm150_vm7, %v230_v54, %v147_v60 }
  0xe1   :  { %v156_v0 = vsel %vm153_vm8, %v155_v62, %v151_v63 }
  0xe2   :  { %v160_v1 = vmul.f32 %v222_v61, %v156_v0 }
  0xe4   :  { %v161_v2 = vsel %vm69_vm0, %v160_v1, 0.0 }
  0xe5   :  { %162 = vadd.xlane.f32.xlu0 %v161_v2 }
 0x158   :  { %v163_v4 = vpop.xlane.xlu0 %162 }
 0x159   :  { %v166_v5 = vadd.f32 %v165_v3, %v163_v4 }
 0x15b   :  { %v213_v6 = vmul.f32 -1.442695, %v166_v5 }
 0x15d   :  { %231 = vpow2.f32 %v213_v6 }
 0x163   :  { %v232_v7 = vpop.eup %231 }
 0x164   :  { %v170_v8 = vadd.f32 1.0, %v232_v7 }
 0x166   :  { %233 = vrcp.f32 %v170_v8  ;;  %v182_v13 = vand.u32 2147483648, %v170_v8  ;;  %v180_v15 = vand.u32 2147483647, %v170_v8  ;;  %vm176_vm10 = vweird.f32 %v170_v8 }
 0x168   :  { %v183_v18 = vor.u32 1.1754944e-38, %v182_v13  ;;  %vm181_vm12 = vcmp.eq.f32.partialorder %v180_v15, 8.507059e+37 }
 0x16c   :  { %v234_v9 = vpop.eup %233 }
 0x16d   :  { %v172_v10 = vmul.f32 %v234_v9, %v170_v8  ;;  %vm177_vm9 = vweird.f32 %v234_v9 }
 0x16e   :  { %vm178_vm11 = vmor %vm176_vm10, %vm177_vm9 }
 0x16f   :  { %v173_v11 = vsub.f32 1.0, %v172_v10 }
 0x171   :  { %v174_v14 = vmul.f32 %v234_v9, %v173_v11 }
 0x173   :  { %v175_v16 = vadd.f32 %v234_v9, %v174_v14 }
 0x175   :  { %v179_v19 = vsel %vm178_vm11, %v234_v9, %v175_v16 }
 0x176   :  { %v184_v20 = vsel %vm181_vm12, %v183_v18, %v179_v19 }
 0x177   :  { %v189_v21 = vperm.slane %v184_v20, %v188_v17 }
 0x179   :  { %192 = vst.msk [vmem:[#allocation9] sm:$0x1] %vm191_vm13, %v189_v21 }
 0x17a   :  { %203 = dma.vmem_to_hbm [thread:$0]  %s199_s5, 16, %s201_s8, [#allocation5]  }
 0x17b   :  { %335 = dma.done.wait [#allocation5], 16  }
 0x17c   :  { %336 = vsyncadd [#allocation5], 4294967280 }
 0x17d   :  { %208 = vsyncpa [#allocation4], 1 }
 0x17e   :  { %209 = vsyncpa [#allocation7], 1 }
 0x17f   :  { %210 = vsyncpa [#allocation5], 1 }

</bundles_post_ra>
